<compile_context>
chip_gen: v6e
topology: v6e:2x2x1
jax: 0.10.0
libtpu: 0.0.40
codegen_flags: <defaults>
</compile_context>

<pallas_src>
import functools

import jax
import jax.numpy as jnp
from jax import lax
from jax.experimental import pallas as pl
from jax.experimental.pallas import tpu as pltpu

EMB_DIM = 4          # emb_dim in the PyTorch source
NEG_SLOPE = 0.01     # F.leaky_relu default negative_slope


def _leaky_relu(v):
    return jnp.where(v >= 0, v, NEG_SLOPE * v)


def _round_up(x, m):
    return ((x + m - 1) // m) * m


def _device_kind():
    try:
        return jax.devices()[0].device_kind.lower()
    except Exception:
        return ""


def _vmem_capacity_bytes():
    try:
        return int(pltpu.get_tpu_info().vmem_capacity_bytes)
    except Exception:
        kind = _device_kind()
        return (64 << 20) if "v7" in kind else (128 << 20)


def _default_use_bf16():
    kind = _device_kind()
    return ("v6" in kind) or ("v7" in kind)


def _pick_tiles(Bp, V, Vp, E, x_isz, w_isz):
    """Pick (TB, TN, vmem_limit_bytes) with padded-layout VMEM accounting."""
    cap = _vmem_capacity_bytes()
    budget = int(cap * 0.7) - (4 << 20)          # ~40-44 MiB on v7x, ~85 MiB on v5e/v6e

    Vl = _round_up(V, 128)                       # lane-padded vocab-in
    El = _round_up(E, 8)                         # (E, V) embed weight -> 8 sublanes
    Fl = _round_up(3 * E, 8)                     # (3E, Vp) fc1 weight -> 16 sublanes
    # Resident weights / biases (x2: Pallas allocates double buffers per spec).
    fixed = (2 * El * Vl * w_isz                 # we (E, V)
             + 2 * Fl * Vp * w_isz               # wf (3E, Vp)
             + 2 * 8 * Vp * 4                    # bf (1, Vp) f32
             + 2 * 8 * 128 * 4)                  # be (1, E) f32

    def footprint(tb, tn):
        xb = 2 * 3 * tb * Vl * x_isz             # double-buffered x tile
        xr = 3 * tb * Vl * x_isz                 # worst case in-kernel (3,TB,V)->(3TB,V) copy
        ob = 2 * tb * tn * 4                     # double-buffered f32 out tile
        return fixed + xb + xr + ob

    tb_cands = [t for t in (512, 256, 128, 64, 32, 16, 8) if t <= Bp and Bp % t == 0]
    if not tb_cands:
        tb_cands = [Bp]
    tn_cands = [t for t in (2048, 1024, 512, 256, 128) if t <= Vp and Vp % t == 0]
    if not tn_cands:
        tn_cands = [Vp]

    tb, tn = tb_cands[-1], tn_cands[-1]
    found = False
    for cand_tb in tb_cands:
        for cand_tn in tn_cands:
            if footprint(cand_tb, cand_tn) <= budget:
                tb, tn = cand_tb, cand_tn
                found = True
                break
        if found:
            break

    # v7x megacore: make sure at least one "parallel" axis has >= 2 steps when possible.
    if Bp // tb == 1 and Vp // tn == 1:
        if tb >= 16 and Bp % (tb // 2) == 0:
            tb //= 2
        elif tn >= 256 and Vp % (tn // 2) == 0:
            tn //= 2

    need = footprint(tb, tn)
    vmem_limit = int(min(cap - (2 << 20), max(need + (8 << 20), 32 << 20)))
    return tb, tn, vmem_limit


def _nextword_kernel(x_ref, we_ref, be_ref, wf_ref, bf_ref, o_ref, *, tb, tn):
    # x_ref : (3, TB, V)   context vectors for this batch tile
    # we_ref: (E, V)       embed weight, resident (sublane-padded only)
    # be_ref: (1, E)  f32  embed bias, resident
    # wf_ref: (3E, Vp)     fc1 weight, resident
    # bf_ref: (1, Vp) f32  fc1 bias, resident
    # o_ref : (TB, TN) f32
    v = x_ref.shape[-1]
    x_flat = x_ref[...].reshape(3 * tb, v)               # contexts stacked on sublanes

    # Stage 1: one fused (3*TB, V) @ (V, E) dot.  we is stored (E, V), so contract
    # both last axes (rhs transposed) to keep the resident buffer lane-dense.
    emb = lax.dot_general(x_flat, we_ref[...],
                          dimension_numbers=(((1,), (1,)), ((), ())),
                          preferred_element_type=jnp.float32)
    emb = _leaky_relu(emb + be_ref[...])                  # (3*TB, E) f32

    # PyTorch concat order: ctx[b, c*E + e] = emb[c*TB + b, e]
    ctx = jnp.concatenate([emb[0:tb], emb[tb:2 * tb], emb[2 * tb:3 * tb]], axis=1)

    # Stage 2: single K=3E dot against the resident fc1 slab's TN window.
    start = pl.multiple_of(pl.program_id(1) * tn, tn)
    wf = wf_ref[:, pl.ds(start, tn)]
    bf = bf_ref[:, pl.ds(start, tn)]
    logits = jnp.dot(ctx.astype(wf.dtype), wf, preferred_element_type=jnp.float32) + bf
    o_ref[...] = _leaky_relu(logits).astype(o_ref.dtype)


def nextword_forward(x, we_t, be, wf_t, bf, *, use_bf16=None):
    """Dense path.  x: (3, B, V), we_t: (V, E), be: (E,), wf_t: (3E, Vout), bf: (Vout,).

    Returns (B, Vout) float32.  use_bf16=None -> bf16 MXU operands on v6e/v7x
    (exact for one-hot x, ~5e-2 for general dense x); pass use_bf16=False for f32."""
    C, B, V = x.shape
    assert C == 3
    Vw, E = we_t.shape
    assert Vw == V
    threeE, Vout = wf_t.shape
    assert threeE == 3 * E

    if use_bf16 is None:
        use_bf16 = _default_use_bf16()
    cdtype = jnp.bfloat16 if use_bf16 else jnp.float32

    Bp = _round_up(max(B, 8), 8)       # sublane-aligned batch (handles any B)
    Vp = _round_up(Vout, 128)          # lane-dense output

    xp = x.astype(cdtype)
    if Bp != B:
        xp = jnp.pad(xp, ((0, 0), (0, Bp - B), (0, 0)))
    we_ev = jnp.transpose(we_t).astype(cdtype)            # (E, V): sublane-padded only
    be2 = be.reshape(1, E).astype(jnp.float32)
    wf2 = wf_t.astype(cdtype)
    bf2 = bf.reshape(1, Vout).astype(jnp.float32)
    if Vp != Vout:
        wf2 = jnp.pad(wf2, ((0, 0), (0, Vp - Vout)))
        bf2 = jnp.pad(bf2, ((0, 0), (0, Vp - Vout)))

    TB, TN, vmem_limit = _pick_tiles(Bp, V, Vp, E, xp.dtype.itemsize, wf2.dtype.itemsize)
    grid = (Bp // TB, Vp // TN)

    cost = pl.CostEstimate(
        flops=2 * 3 * Bp * V * E + 2 * Bp * (3 * E) * Vp + 4 * Bp * Vp,
        transcendentals=0,
        bytes_accessed=(xp.nbytes + we_ev.nbytes + be2.nbytes + wf2.nbytes
                        + bf2.nbytes + Bp * Vp * 4),
    )

    out = pl.pallas_call(
        functools.partial(_nextword_kernel, tb=TB, tn=TN),
        out_shape=jax.ShapeDtypeStruct((Bp, Vp), jnp.float32),
        grid_spec=pltpu.PrefetchScalarGridSpec(
            num_scalar_prefetch=0,
            grid=grid,
            in_specs=[
                pl.BlockSpec((3, TB, V), lambda i, j: (0, i, 0)),   # x batch tile
                pl.BlockSpec((E, V), lambda i, j: (0, 0)),          # we (resident)
                pl.BlockSpec((1, E), lambda i, j: (0, 0)),          # be (resident)
                pl.BlockSpec((3 * E, Vp), lambda i, j: (0, 0)),     # wf (resident)
                pl.BlockSpec((1, Vp), lambda i, j: (0, 0)),         # bf (resident)
            ],
            out_specs=pl.BlockSpec((TB, TN), lambda i, j: (i, j)),
        ),
        compiler_params=pltpu.CompilerParams(
            dimension_semantics=("parallel", "parallel"),
            vmem_limit_bytes=vmem_limit),
        cost_estimate=cost,
    )(xp, we_ev, be2, wf2, bf2)

    return out[:B, :Vout]


def _fc_kernel(ctx_ref, wf_ref, bf_ref, o_ref, *, tn):
    start = pl.multiple_of(pl.program_id(1) * tn, tn)
    wf = wf_ref[:, pl.ds(start, tn)]
    bf = bf_ref[:, pl.ds(start, tn)]
    logits = jnp.dot(ctx_ref[...], wf, preferred_element_type=jnp.float32) + bf
    o_ref[...] = _leaky_relu(logits).astype(o_ref.dtype)


def nextword_forward_ids(ids, we_t, be, wf_t, bf, *, use_bf16=None):
    """Fast path for one-hot inputs given as word ids.  ids: (3, B) int32.

    Mathematically identical to nextword_forward(one_hot(ids, V), ...) but removes
    the dense 3*B*V x DMA: stage 1 is a tiny row gather, stage 2 runs in Pallas."""
    C, B = ids.shape
    assert C == 3
    V, E = we_t.shape
    threeE, Vout = wf_t.shape
    assert threeE == 3 * E
    if use_bf16 is None:
        use_bf16 = _default_use_bf16()
    cdtype = jnp.bfloat16 if use_bf16 else jnp.float32

    emb = _leaky_relu(jnp.take(we_t.astype(jnp.float32), ids, axis=0)
                      + be.reshape(1, 1, E).astype(jnp.float32))       # (3, B, E)
    ctx = jnp.transpose(emb, (1, 0, 2)).reshape(B, 3 * E)              # PyTorch concat order

    Bp = _round_up(max(B, 8), 8)
    Vp = _round_up(Vout, 128)
    if Bp != B:
        ctx = jnp.pad(ctx, ((0, Bp - B), (0, 0)))
    ctx = ctx.astype(cdtype)
    wf2 = wf_t.astype(cdtype)
    bf2 = bf.reshape(1, Vout).astype(jnp.float32)
    if Vp != Vout:
        wf2 = jnp.pad(wf2, ((0, 0), (0, Vp - Vout)))
        bf2 = jnp.pad(bf2, ((0, 0), (0, Vp - Vout)))

    TB, TN, vmem_limit = _pick_tiles(Bp, 3 * E, Vp, E,
                                     ctx.dtype.itemsize, wf2.dtype.itemsize)
    grid = (Bp // TB, Vp // TN)

    out = pl.pallas_call(
        functools.partial(_fc_kernel, tn=TN),
        out_shape=jax.ShapeDtypeStruct((Bp, Vp), jnp.float32),
        grid_spec=pltpu.PrefetchScalarGridSpec(
            num_scalar_prefetch=0,
            grid=grid,
            in_specs=[
                pl.BlockSpec((TB, 3 * E), lambda i, j: (i, 0)),     # ctx batch tile
                pl.BlockSpec((3 * E, Vp), lambda i, j: (0, 0)),     # wf (resident)
                pl.BlockSpec((1, Vp), lambda i, j: (0, 0)),         # bf (resident)
            ],
            out_specs=pl.BlockSpec((TB, TN), lambda i, j: (i, j)),
        ),
        compiler_params=pltpu.CompilerParams(
            dimension_semantics=("parallel", "parallel"),
            vmem_limit_bytes=vmem_limit),
    )(ctx, wf2, bf2)

    return out[:B, :Vout]


def reference_forward(x, we_t, be, wf_t, bf):
    emb = _leaky_relu(jnp.einsum("cbv,ve->cbe", x, we_t) + be.reshape(1, 1, -1))
    ctx = jnp.concatenate([emb[0], emb[1], emb[2]], axis=1)
    return _leaky_relu(ctx @ wf_t + bf.reshape(1, -1))


if __name__ == "__main__":
    key = jax.random.PRNGKey(0)

    def make_case(case_key, num_words, vocab_size, batch):
        k_x, k_we, k_be, k_wf, k_bf = jax.random.split(case_key, 5)
        bound_e = 1.0 / jnp.sqrt(num_words)
        we_t = jax.random.uniform(k_we, (num_words, EMB_DIM), jnp.float32,
                                  -bound_e, bound_e)                 # embed.weight^T
        be = jax.random.uniform(k_be, (EMB_DIM,), jnp.float32, -bound_e, bound_e)
        bound_f = 1.0 / jnp.sqrt(3 * EMB_DIM)
        wf_t = jax.random.uniform(k_wf, (3 * EMB_DIM, vocab_size), jnp.float32,
                                  -bound_f, bound_f)                 # fc1.weight^T
        bf = jax.random.uniform(k_bf, (vocab_size,), jnp.float32, -bound_f, bound_f)
        ids = jax.random.randint(k_x, (3, batch), 0, num_words)
        x = jax.nn.one_hot(ids, num_words, dtype=jnp.float32)        # (3, B, V)
        return ids, x, we_t, be, wf_t, bf

    k1, k2 = jax.random.split(key)
    # Case 1: config consistent with the module (num_words=16, vocab=16, batch=8).
    # Case 2: ragged sizes exercising batch / lane padding (batch=10, V=19, Vout=33).
    for case_key, (nw, vs, b) in ((k1, (16, 16, 8)), (k2, (19, 33, 10))):
        ids, x, we_t, be, wf_t, bf = make_case(case_key, nw, vs, b)
        ref = reference_forward(x, we_t, be, wf_t, bf)

        # f32 dense path: exact match with the reference.
        out = jax.block_until_ready(
            nextword_forward(x, we_t, be, wf_t, bf, use_bf16=False))
        assert out.shape == (b, vs)
        assert jnp.allclose(out, ref, atol=1e-5, rtol=1e-5), "f32 dense path mismatch"

        # Auto-dtype path (bf16 operands on v6e/v7x, f32 elsewhere): looser tolerance.
        out_auto = jax.block_until_ready(nextword_forward(x, we_t, be, wf_t, bf))
        assert jnp.allclose(out_auto, ref, atol=5e-2, rtol=5e-2), "auto dense path mismatch"

        # id-gather fast path (f32): exact match with the reference.
        out_ids = jax.block_until_ready(
            nextword_forward_ids(ids.astype(jnp.int32), we_t, be, wf_t, bf,
                                 use_bf16=False))
        assert out_ids.shape == (b, vs)
        assert jnp.allclose(out_ids, ref, atol=1e-5, rtol=1e-5), "id fast path mismatch"

    print("KERNEL_OK")
</pallas_src>

<mosaic_0001>
module attributes {stable_mosaic.version = 11 : i64} {
  func.func @_nextword_kernel(%arg0: i32, %arg1: i32, %arg2: memref<3x8x16xf32, #tpu.memory_space<vmem>>, %arg3: memref<4x16xf32, #tpu.memory_space<vmem>>, %arg4: memref<1x4xf32, #tpu.memory_space<vmem>>, %arg5: memref<12x128xf32, #tpu.memory_space<vmem>>, %arg6: memref<1x128xf32, #tpu.memory_space<vmem>>, %arg7: memref<8x128xf32, #tpu.memory_space<vmem>>) attributes {dimension_semantics = [#tpu.dimension_semantics<parallel>, #tpu.dimension_semantics<parallel>], iteration_bounds = array<i64: 1, 1>, scalar_prefetch = 0 : i64, scratch_operands = 0 : i64, tpu.core_type = #tpu.core_type<tc>, window_params = [{transform_indices = @transform_0, window_bounds = array<i64: 3, 8, 16>}, {pipeline_mode = #tpu.pipeline_mode<synchronous>, transform_indices = @transform_1, window_bounds = array<i64: 4, 16>}, {pipeline_mode = #tpu.pipeline_mode<synchronous>, transform_indices = @transform_2, window_bounds = array<i64: 1, 4>}, {pipeline_mode = #tpu.pipeline_mode<synchronous>, transform_indices = @transform_3, window_bounds = array<i64: 12, 128>}, {pipeline_mode = #tpu.pipeline_mode<synchronous>, transform_indices = @transform_4, window_bounds = array<i64: 1, 128>}, {transform_indices = @transform_5, window_bounds = array<i64: 8, 128>}]} {
    %c0 = arith.constant 0 : index
    %c0_0 = arith.constant 0 : index
    %c0_1 = arith.constant 0 : index
    %0 = vector.load %arg2[%c0, %c0_0, %c0_1] : memref<3x8x16xf32, #tpu.memory_space<vmem>>, vector<3x8x16xf32>
    %1 = vector.shape_cast %0 : vector<3x8x16xf32> to vector<24x16xf32>
    %c0_2 = arith.constant 0 : index
    %c0_3 = arith.constant 0 : index
    %2 = vector.load %arg3[%c0_2, %c0_3] : memref<4x16xf32, #tpu.memory_space<vmem>>, vector<4x16xf32>
    %cst = arith.constant dense<0.000000e+00> : vector<24x4xf32>
    %3 = tpu.matmul %1, %2, %cst {dimension_numbers = #tpu.dot_dimension_numbers<[1], [1], [0], [0], [0, 0, 1, 0], [], []>} : vector<24x16xf32>, vector<4x16xf32>, vector<24x4xf32> -> vector<24x4xf32>
    %c0_4 = arith.constant 0 : index
    %c0_5 = arith.constant 0 : index
    %4 = vector.load %arg4[%c0_4, %c0_5] : memref<1x4xf32, #tpu.memory_space<vmem>>, vector<1x4xf32>
    %5 = vector.broadcast %4 : vector<1x4xf32> to vector<24x4xf32>
    %6 = arith.addf %3, %5 : vector<24x4xf32>
    %cst_6 = arith.constant 0.000000e+00 : f32
    %7 = vector.broadcast %cst_6 : f32 to vector<24x4xf32>
    %8 = arith.cmpf oge, %6, %7 : vector<24x4xf32>
    %cst_7 = arith.constant 0.00999999977 : f32
    %9 = vector.broadcast %cst_7 : f32 to vector<24x4xf32>
    %10 = arith.mulf %9, %6 : vector<24x4xf32>
    %11 = arith.select %8, %6, %10 : vector<24x4xi1>, vector<24x4xf32>
    %12 = vector.extract_strided_slice %11 {offsets = [0, 0], sizes = [8, 4], strides = [1, 1]} : vector<24x4xf32> to vector<8x4xf32>
    %13 = vector.extract_strided_slice %11 {offsets = [8, 0], sizes = [8, 4], strides = [1, 1]} : vector<24x4xf32> to vector<8x4xf32>
    %14 = vector.extract_strided_slice %11 {offsets = [16, 0], sizes = [8, 4], strides = [1, 1]} : vector<24x4xf32> to vector<8x4xf32>
    %15 = tpu.concatenate %12, %13, %14 in 1 : vector<8x4xf32>, vector<8x4xf32>, vector<8x4xf32> -> vector<8x12xf32>
    %c128_i32 = arith.constant 128 : i32
    %16 = arith.muli %arg1, %c128_i32 : i32
    %17 = tpu.assume_multiple %16, 128 : i32
    %c0_8 = arith.constant 0 : index
    %18 = arith.index_cast %17 : i32 to index
    %19 = vector.load %arg5[%c0_8, %18] : memref<12x128xf32, #tpu.memory_space<vmem>>, vector<12x128xf32>
    %c0_9 = arith.constant 0 : index
    %20 = arith.index_cast %17 : i32 to index
    %21 = vector.load %arg6[%c0_9, %20] : memref<1x128xf32, #tpu.memory_space<vmem>>, vector<1x128xf32>
    %cst_10 = arith.constant dense<0.000000e+00> : vector<8x128xf32>
    %22 = tpu.matmul %15, %19, %cst_10 {dimension_numbers = #tpu.dot_dimension_numbers<[1], [0], [0], [1], [0, 0, 1, 1], [], []>} : vector<8x12xf32>, vector<12x128xf32>, vector<8x128xf32> -> vector<8x128xf32>
    %23 = vector.broadcast %21 : vector<1x128xf32> to vector<8x128xf32>
    %24 = arith.addf %22, %23 : vector<8x128xf32>
    %cst_11 = arith.constant 0.000000e+00 : f32
    %25 = vector.broadcast %cst_11 : f32 to vector<8x128xf32>
    %26 = arith.cmpf oge, %24, %25 : vector<8x128xf32>
    %cst_12 = arith.constant 0.00999999977 : f32
    %27 = vector.broadcast %cst_12 : f32 to vector<8x128xf32>
    %28 = arith.mulf %27, %24 : vector<8x128xf32>
    %29 = arith.select %26, %24, %28 : vector<8x128xi1>, vector<8x128xf32>
    %c0_13 = arith.constant 0 : index
    %c0_14 = arith.constant 0 : index
    %30 = vector.load %arg7[%c0_13, %c0_14] : memref<8x128xf32, #tpu.memory_space<vmem>>, vector<8x128xf32>
    tpu.vector_store %arg7[%c0_13, %c0_14], %29 {strides = array<i32>} : memref<8x128xf32, #tpu.memory_space<vmem>>, vector<8x128xf32>,
    return
  }
  func.func @transform_0(%arg0: i32, %arg1: i32) -> (i32, i32, i32) {
    %c0_i32 = arith.constant 0 : i32
    %c0_i32_0 = arith.constant 0 : i32
    %c0_i32_1 = arith.constant 0 : i32
    return %c0_i32, %arg0, %c0_i32_0 : i32, i32, i32
  }
  func.func @transform_1(%arg0: i32, %arg1: i32) -> (i32, i32) {
    %c0_i32 = arith.constant 0 : i32
    %c0_i32_0 = arith.constant 0 : i32
    %c0_i32_1 = arith.constant 0 : i32
    return %c0_i32, %c0_i32_0 : i32, i32
  }
  func.func @transform_2(%arg0: i32, %arg1: i32) -> (i32, i32) {
    %c0_i32 = arith.constant 0 : i32
    %c0_i32_0 = arith.constant 0 : i32
    %c0_i32_1 = arith.constant 0 : i32
    return %c0_i32, %c0_i32_0 : i32, i32
  }
  func.func @transform_3(%arg0: i32, %arg1: i32) -> (i32, i32) {
    %c0_i32 = arith.constant 0 : i32
    %c0_i32_0 = arith.constant 0 : i32
    %c0_i32_1 = arith.constant 0 : i32
    return %c0_i32, %c0_i32_0 : i32, i32
  }
  func.func @transform_4(%arg0: i32, %arg1: i32) -> (i32, i32) {
    %c0_i32 = arith.constant 0 : i32
    %c0_i32_0 = arith.constant 0 : i32
    %c0_i32_1 = arith.constant 0 : i32
    return %c0_i32, %c0_i32_0 : i32, i32
  }
  func.func @transform_5(%arg0: i32, %arg1: i32) -> (i32, i32) {
    %c0_i32 = arith.constant 0 : i32
    return %arg0, %arg1 : i32, i32
  }
}

</mosaic_0001>

<bundles_post_ra>
// kernel: tpu_custom_call.1
= control target key start
LH: loop header
LB: loop body
LE: loop exit
PB: predicated region body
PF: predicated region fallthrough
CT: control target
= control target key end

     0   :  { %10 = vsyncpa [#allocation3], 0  ;;  %s489_s0 = inlined_call_operand.hbm [shape: f32[3,8,16], index: 0, kind: input, shape index: {}]   ;;  %s490_s1 = inlined_call_operand.hbm [shape: f32[4,16], index: 1, kind: input, shape index: {}]   ;;  %s491_s2 = inlined_call_operand.vmem [shape: f32[1,4], index: 2, kind: input, shape index: {}]   ;;  %s492_s3 = inlined_call_operand.hbm [shape: f32[12,128], index: 3, kind: input, shape index: {}]   ;;  %s493_s4 = inlined_call_operand.vmem [shape: f32[1,128], index: 4, kind: input, shape index: {}]   ;;  %s494_s5 = inlined_call_operand.hbm [shape: f32[8,128], index: 5, kind: output, shape index: {}]  }
   0x1   :  { %11 = vsyncpa [#allocation6], 0 }
   0x2   :  { %12 = vsyncpa [#allocation4], 0  ;;  %s429_s18 = smov [#allocation5]   ;;  %s430_s20 = smov [#allocation2]  }
   0x3   :  { %s31_s19 = sshll.u32 %s429_s18, 4  ;;  %s18_s21 = sshll.u32 %s430_s20, 4  ;;  %s32_s19 = int_to_ptr.vmem [resolvable:$true] %s31_s19  ;;  %s19_s21 = int_to_ptr.vmem [resolvable:$true] %s18_s21 }
   0x4   :  { %s351_s22 = scalar_lea.vmem %s32_s19, 64  ;;  %p356_p1 = scmp.lt.s32.totalorder %s32_s19, %s32_s19 }
   0x5   :  { %p352_p0 = scmp.ne.s32.totalorder %s32_s19, %s351_s22  ;;  %p357_p2 = scmp.lt.s32.totalorder %s351_s22, %s351_s22 }
   0x7   :  { %p358_p3 = por %p357_p2, %p356_p1 }
   0x9   :  { %p359_p4 = pnand %p358_p3, %p352_p0 }
   0xb   :  { %362 = shalt.err (!%p359_p4)
}
   0xc   :  { %34 = dma.hbm_to_vmem [thread:$0]  %s490_s1, 64, %s32_s19, [#allocation6]  }
   0xd   :  { %s371_s25 = scalar_lea.vmem %s19_s21, 384  ;;  %p376_p6 = scmp.lt.s32.totalorder %s19_s21, %s19_s21 }
   0xe   :  { %p372_p5 = scmp.ne.s32.totalorder %s19_s21, %s371_s25  ;;  %p377_p7 = scmp.lt.s32.totalorder %s371_s25, %s371_s25 }
  0x10   :  { %p378_p8 = por %p377_p7, %p376_p6 }
  0x12   :  { %p379_p9 = pnand %p378_p8, %p372_p5 }
  0x14   :  { %382 = shalt.err (!%p379_p9)
}
  0x15   :  { %s431_s26 = smov 128   ;;  %s432_s27 = smov 8  }
  0x16   :  { %24 = dma.hbm_to_vmem [thread:$0]  %s489_s0, 384, %s19_s21, [#allocation3], %s431_s26, %s431_s26, %s432_s27  }
  0x17   :  { %s433_s30 = smov [#allocation7]  }
  0x18   :  { %s42_s6 = sshll.u32 %s433_s30, 4  ;;  %s43_s6 = int_to_ptr.vmem [resolvable:$true] %s42_s6 }
  0x19   :  { %s391_s7 = scalar_lea.vmem %s43_s6, 256  ;;  %p396_p11 = scmp.lt.s32.totalorder %s43_s6, %s43_s6 }
  0x1a   :  { %p392_p10 = scmp.ne.s32.totalorder %s43_s6, %s391_s7  ;;  %p397_p12 = scmp.lt.s32.totalorder %s391_s7, %s391_s7 }
  0x1c   :  { %p398_p13 = por %p397_p12, %p396_p11 }
  0x1e   :  { %p399_p0 = pnand %p398_p13, %p392_p10 }
  0x20   :  { %402 = shalt.err (!%p399_p0)
}
  0x21   :  { %48 = dma.hbm_to_vmem [thread:$0]  %s492_s3, 256, %s43_s6, [#allocation6], %s431_s26, %s431_s26, %s432_s27  }
  0x22   :  { %423 = dma.done.wait [#allocation3], 384  }
  0x23   :  { %424 = vsyncadd [#allocation3], 4294966912 }
  0x24   :  { %425 = dma.done.wait [#allocation6], 320  }
  0x25   :  { %426 = vsyncadd [#allocation6], 4294966976  ;;  %v434_v0 = vmov 0.0   ;;  %vm435_vm0 = vmmov 0   ;;  %vm71_vm1 = vcmask 130048   ;;  %v60_v2 = vld [vmem:[#allocation2] sm:$0xff] }
  0x26   :  { %314 = vmatprep.subr.mxu0 %v434_v0  ;;  %316 = vmatprep.mubr.msk.f32.mxu0 %vm435_vm0, %v434_v0  ;;  %v63_v1 = vld [vmem:[#allocation5] sm:$0xf]  ;;  %v62_v3 = vld [vmem:[#allocation2 + $0x10] sm:$0xff]  ;;  %v61_v4 = vld [vmem:[#allocation2 + $0x8] sm:$0xff]  ;;  %vm203_vm2 = vcmask 1043456   ;;  %s436_s9 = smov 4  }
  0x27   :  { %332 = vmatprep.subr.mxu1 %v434_v0  ;;  %322 = vmatprep.mubr.msk.f32.mxu1 %vm435_vm0, %v434_v0  ;;  %v190_v5 = vld [vmem:[#allocation7 + $0x8] sm:$0xf]  ;;  %v189_v6 = vld [vmem:[#allocation7] sm:$0xff]  ;;  %vm181_vm6 = vcmask 31744   ;;  %vm183_vm7 = vcmask 64512   ;;  %vm199_vm8 = vcmask 97280  }
  0x28   :  { %315 = vmatpush3.xpose.msk.msra.mxu0 %vm71_vm1, %v63_v1  ;;  %333 = vmatpush3.xpose.msk.msra.mxu1 %vm71_vm1, %v63_v1  ;;  %v299_v7 = vld [vmem:[%s491_s2] ss:$0 sm:$0xff]  ;;  %s437_s11 = smov [#allocation8]  }
  0x29   :  { %325 = vmatprep.subr.mxu1 %v434_v0  ;;  %v304_v27 = vld [vmem:[%s493_s4] ss:$0 sm:$0xff]  ;;  %s287_s12 = sshll.u32 %s437_s11, 4  ;;  %s288_s12 = int_to_ptr.vmem [resolvable:$true] %s287_s12 }
  0x2a   :  { %s403_s13 = scalar_lea.vmem %s288_s12, 128  ;;  %p408_p2 = scmp.lt.s32.totalorder %s288_s12, %s288_s12 }
  0x2b   :  { %317 = vmatmul.mubr.msk.f32.vlgmr.msra.gmra.mxu0 %vm71_vm1, %v60_v2  ;;  %323 = vmatmul.mubr.msk.f32.vlgmr.msra.gmra.mxu1 %vm71_vm1, %v62_v3  ;;  %p404_p1 = scmp.ne.s32.totalorder %s288_s12, %s403_s13  ;;  %p409_p3 = scmp.lt.s32.totalorder %s403_s13, %s403_s13 }
  0x2c   :  { %319 = vmatprep.mubr.msk.f32.mxu0 %vm435_vm0, %v434_v0  ;;  %329 = vmatprep.mubr.msk.f32.mxu1 %vm435_vm0, %v434_v0 }
  0x2d   :  { %326 = vmatpush3.msk.msra.mxu1 %vm203_vm2, %v190_v5  ;;  %p410_p4 = por %p409_p3, %p408_p2 }
  0x2e   :  { %327 = vmatprep.subr.mxu1 %v434_v0 }
  0x2f   :  { %320 = vmatmul.mubr.msk.f32.gmra.mxu0 %vm71_vm1, %v61_v4  ;;  %328 = vmatpush3.msra.mxu1 %v189_v6  ;;  %p411_p5 = pnand %p410_p4, %p404_p1 }
  0xeb   :  { %v150_v8 = vpop.f32.mrf.mxu0  ;;  %v160_v9 = vpop.f32.mrf.mxu1 }
  0xec   :  { %v151_v10 = vadd.f32 %v299_v7, %v150_v8  ;;  %v161_v15 = vadd.f32 %v299_v7, %v160_v9 }
  0xed   :  { %v318_v11 = vpop.f32.mrf.mxu0  ;;  %v324_v12 = vpop.f32.mrf.mxu1 }
  0xee   :  { %v169_v19 = vmul.f32 0.01, %v161_v15  ;;  %vm166_vm4 = vcmp.ge.f32.partialorder %v161_v15, 0.0  ;;  %v167_v21 = vmul.f32 0.01, %v151_v10  ;;  %vm164_vm5 = vcmp.ge.f32.partialorder %v151_v10, 0.0 }
  0xef   :  { %v155_v13 = vpop.f32.mrf.mxu0 }
  0xf0   :  { %v156_v14 = vadd.f32 %v299_v7, %v155_v13  ;;  %v172_v20 = vsel %vm166_vm4, %v161_v15, %v169_v19  ;;  %v170_v23 = vsel %vm164_vm5, %v151_v10, %v167_v21 }
  0xf1   :  { %v321_v16 = vpop.f32.mrf.mxu0 }
  0xf2   :  { %vm165_vm3 = vcmp.ge.f32.partialorder %v156_v14, 0.0  ;;  %v168_v17 = vmul.f32 0.01, %v156_v14 }
  0xf4   :  { %v171_v18 = vsel %vm165_vm3, %v156_v14, %v168_v17 }
  0xf5   :  { %174 = vrot.lane.b32.xlu0 %v171_v18, %s436_s9 }
  0xf9   :  { %178 = vrot.lane.b32.xlu0 %v172_v20, %s432_s27 }
 0x167   :  { %v175_v22 = vpop.permute.xlu0 %174 }
 0x168   :  { %v182_v24 = vsel %vm181_vm6, %v170_v23, %v175_v22 }
 0x16b   :  { %v179_v25 = vpop.permute.xlu0 %178 }
 0x16c   :  { %v184_v26 = vsel %vm183_vm7, %v182_v24, %v179_v25 }
 0x16d   :  { %330 = vmatmul.mubr.msk.f32.vlgmr.msra.gmra.mxu1 %vm199_vm8, %v184_v26 }
 0x22d   :  { %v273_v28 = vpop.f32.mrf.mxu1 }
 0x22e   :  { %v274_v29 = vadd.f32 %v304_v27, %v273_v28 }
 0x22f   :  { %v331_v30 = vpop.f32.mrf.mxu1 }
 0x230   :  { %v278_v31 = vmul.f32 0.01, %v274_v29  ;;  %vm277_vm9 = vcmp.ge.f32.partialorder %v274_v29, 0.0 }
 0x232   :  { %v279_v32 = vsel %vm277_vm9, %v274_v29, %v278_v31 }
 0x233   :  { %280 = vst [vmem:[#allocation8] sm:$0xff] %v279_v32 }
 0x234   :  { %414 = shalt.err (!%p411_p5)
}
 0x235   :  { %290 = dma.vmem_to_hbm [thread:$0]  %s288_s12, 128, %s494_s5, [#allocation4]  }
 0x236   :  { %427 = dma.done.wait [#allocation4], 128  }
 0x237   :  { %428 = vsyncadd [#allocation4], 4294967168 }
 0x238   :  { %294 = vsyncpa [#allocation3], 1 }
 0x239   :  { %295 = vsyncpa [#allocation6], 1 }
 0x23a   :  { %296 = vsyncpa [#allocation4], 1 }

</bundles_post_ra>
